<compile_context>
chip_gen: v7x
topology: tpu7x:2x2x1
jax: 0.10.0
libtpu: 0.0.40
codegen_flags: <defaults>
</compile_context>

<pallas_src>
import functools

import jax
import jax.numpy as jnp
from jax.experimental import pallas as pl
from jax.experimental.pallas import tpu as pltpu


def _adain_kernel(x_ref, w_ref, b_ref, o_ref, *, eps):
    # x_ref: (TR, HW) tile of instance rows; w_ref/b_ref: matching (TR, 1) tiles.
    x = x_ref[...].astype(jnp.float32)
    mean = jnp.mean(x, axis=-1, keepdims=True)
    centered = x - mean
    # Biased variance (matches F.batch_norm with training=True).
    var = jnp.mean(centered * centered, axis=-1, keepdims=True)
    inv_std = jax.lax.rsqrt(var + eps)

    # Fused per-row affine: 1 mul + 1 add per element on the output path.
    scale = inv_std * w_ref[...].astype(jnp.float32)
    shift = b_ref[...].astype(jnp.float32) - mean * scale
    o_ref[...] = (x * scale + shift).astype(o_ref.dtype)


def _round_up(x, m):
    return (x + m - 1) // m * m


def _choose_tile_rows(bc, hw, elem_bytes, target_block_bytes=4 << 20, min_steps=4):
    """Pick (TR, grid_steps) for the row dimension.

    Constraints:
      * TR is a multiple of the sublane packing (8 rows f32, 16 rows bf16).
      * TR x HW block stays under ~target_block_bytes.
      * >= min_steps grid steps when BC allows (>= 2 per v7x TensorCore),
        preferring an even step count so both cores get equal work.
      * Prefer a TR that divides BC exactly (no ragged edge block / no host
        padding); otherwise fall back to a Pallas-masked ragged last block.
    """
    align = 8 * max(1, 4 // elem_bytes)
    row_bytes = max(hw, 128) * elem_bytes              # lanes pad to 128 in VMEM
    tr_cap = max(align, (target_block_bytes // row_bytes) // align * align)
    if bc // min_steps >= align:
        tr_cap = min(tr_cap, (bc // min_steps) // align * align)
    elif bc // 2 >= align:
        tr_cap = min(tr_cap, (bc // 2) // align * align)
    tr_cap = max(align, min(tr_cap, _round_up(bc, align)))

    best_odd = None
    for tr in range(tr_cap, 0, -align):
        if bc % tr:
            continue
        steps = bc // tr
        if steps % 2 == 0:
            return tr, steps                           # largest TR, balanced grid
        if best_odd is None:
            best_odd = tr
    if best_odd is not None:
        return best_odd, bc // best_odd
    # No multiple-of-align divisor of BC: ragged last block (Pallas masks it).
    return tr_cap, pl.cdiv(bc, tr_cap)


def _vmem_limit_bytes(tr, hw, elem_bytes):
    """Scoped-VMEM limit from the actual double-buffered footprint + headroom."""
    hw_pad = _round_up(hw, 128)
    x_block = tr * hw_pad * elem_bytes                 # one x / out block
    wb_block = tr * 128 * 4                            # (TR,1) f32, lane-padded
    footprint = 2 * 2 * x_block + 2 * 2 * wb_block     # double-buffered in+out
    intermediates = 2 * tr * hw_pad * 4                # f32 temporaries headroom
    limit = footprint + intermediates + (4 << 20)
    limit = max(limit, 16 << 20)                       # sane floor
    try:
        cap = pltpu.get_tpu_info().vmem_capacity_bytes
    except Exception:
        cap = 64 << 20                                 # smallest across v5e/v6e/v7x
    return int(min(limit, max(cap - (8 << 20), 16 << 20)))


def adaptive_instance_norm_2d(x, weight, bias, eps=1e-5):
    """x: (B, C, H, W); weight, bias: (B*C,).  Returns (B, C, H, W)."""
    B, C, H, W = x.shape
    BC, HW = B * C, H * W
    elem_bytes = jnp.dtype(x.dtype).itemsize

    TR, steps = _choose_tile_rows(BC, HW, elem_bytes)
    vmem_limit = _vmem_limit_bytes(TR, HW, elem_bytes)

    # Flattened views only — no padded copies of x, no output slice copy.
    x2d = x.reshape(BC, HW)
    w2d = weight.reshape(BC, 1).astype(jnp.float32)
    b2d = bias.reshape(BC, 1).astype(jnp.float32)

    cost = pl.CostEstimate(
        flops=6 * BC * HW,
        transcendentals=BC,
        bytes_accessed=2 * BC * HW * elem_bytes + 2 * BC * 4,
    )

    kernel = functools.partial(_adain_kernel, eps=eps)

    # TODO(synk): for very small spatial maps (HW < 128) lane utilization is
    # poor; a (TR*H, W)-folded layout or leaving those layers to XLA would be
    # faster.  For extremely large HW (row blocks that cannot double-buffer in
    # VMEM) a second, HW-tiled reduction grid axis would be needed.
    out2d = pl.pallas_call(
        kernel,
        out_shape=jax.ShapeDtypeStruct((BC, HW), x.dtype),
        grid_spec=pltpu.PrefetchScalarGridSpec(
            num_scalar_prefetch=0,
            grid=(steps,),
            in_specs=[
                pl.BlockSpec((TR, HW), lambda i: (i, 0)),
                pl.BlockSpec((TR, 1), lambda i: (i, 0)),
                pl.BlockSpec((TR, 1), lambda i: (i, 0)),
            ],
            out_specs=pl.BlockSpec((TR, HW), lambda i: (i, 0)),
        ),
        compiler_params=pltpu.CompilerParams(
            dimension_semantics=("parallel",),
            vmem_limit_bytes=vmem_limit,
        ),
        cost_estimate=cost,
    )(x2d, w2d, b2d)

    return out2d.reshape(B, C, H, W)


def _reference(x, weight, bias, eps=1e-5):
    # Pure-JAX reference mirroring F.batch_norm(training=True) on (1, B*C, H, W).
    B, C, H, W = x.shape
    xr = x.reshape(B * C, H * W).astype(jnp.float32)
    mean = xr.mean(axis=-1, keepdims=True)
    var = ((xr - mean) ** 2).mean(axis=-1, keepdims=True)
    out = (xr - mean) / jnp.sqrt(var + eps)
    out = out * weight.reshape(-1, 1) + bias.reshape(-1, 1)
    return out.reshape(B, C, H, W).astype(x.dtype)


if __name__ == "__main__":
    B, C, H, W = 2, 4, 16, 16

    key = jax.random.PRNGKey(0)
    kx, kw, kb = jax.random.split(key, 3)
    x = jax.random.normal(kx, (B, C, H, W), dtype=jnp.float32)

    # weight/bias must be assigned before calling AdaIN (normally produced by a
    # style MLP); deterministic synthetic init of shape (B*C,):
    weight = 1.0 + 0.1 * jax.random.normal(kw, (B * C,), dtype=jnp.float32)
    bias = 0.1 * jax.random.normal(kb, (B * C,), dtype=jnp.float32)

    # TODO(synk): running_mean/running_var buffer updates are not materialized
    # (they do not affect the forward output when training=True).

    out = adaptive_instance_norm_2d(x, weight, bias)
    out = jax.block_until_ready(out)

    ref = _reference(x, weight, bias)
    assert out.shape == (B, C, H, W)
    assert jnp.allclose(out, ref, atol=1e-4, rtol=1e-4), "mismatch vs reference"
    print("KERNEL_OK")
</pallas_src>

<mosaic_0001>
module attributes {stable_mosaic.version = 11 : i64} {
  func.func @_adain_kernel(%arg0: i32, %arg1: memref<8x256xf32, #tpu.memory_space<vmem>>, %arg2: memref<8x1xf32, #tpu.memory_space<vmem>>, %arg3: memref<8x1xf32, #tpu.memory_space<vmem>>, %arg4: memref<8x256xf32, #tpu.memory_space<vmem>>) attributes {dimension_semantics = [#tpu.dimension_semantics<parallel>], iteration_bounds = array<i64: 1>, scalar_prefetch = 0 : i64, scratch_operands = 0 : i64, tpu.core_type = #tpu.core_type<tc>, window_params = [{transform_indices = @transform_0, window_bounds = array<i64: 8, 256>}, {transform_indices = @transform_1, window_bounds = array<i64: 8, 1>}, {transform_indices = @transform_2, window_bounds = array<i64: 8, 1>}, {transform_indices = @transform_3, window_bounds = array<i64: 8, 256>}]} {
    %c0 = arith.constant 0 : index
    %c0_0 = arith.constant 0 : index
    %0 = vector.load %arg1[%c0, %c0_0] : memref<8x256xf32, #tpu.memory_space<vmem>>, vector<8x256xf32>
    %cst = arith.constant dense<0.000000e+00> : vector<8xf32>
    %1 = vector.multi_reduction <add>, %0, %cst [1] : vector<8x256xf32> to vector<8xf32>
    %2 = vector.shape_cast %1 : vector<8xf32> to vector<8x1xf32>
    %cst_1 = arith.constant 2.560000e+02 : f32
    %3 = vector.broadcast %cst_1 : f32 to vector<8x1xf32>
    %4 = arith.divf %2, %3 : vector<8x1xf32>
    %5 = vector.broadcast %4 : vector<8x1xf32> to vector<8x256xf32>
    %6 = arith.subf %0, %5 : vector<8x256xf32>
    %7 = arith.mulf %6, %6 : vector<8x256xf32>
    %cst_2 = arith.constant dense<0.000000e+00> : vector<8xf32>
    %8 = vector.multi_reduction <add>, %7, %cst_2 [1] : vector<8x256xf32> to vector<8xf32>
    %9 = vector.shape_cast %8 : vector<8xf32> to vector<8x1xf32>
    %cst_3 = arith.constant 2.560000e+02 : f32
    %10 = vector.broadcast %cst_3 : f32 to vector<8x1xf32>
    %11 = arith.divf %9, %10 : vector<8x1xf32>
    %cst_4 = arith.constant 9.99999974E-6 : f32
    %12 = vector.broadcast %cst_4 : f32 to vector<8x1xf32>
    %13 = arith.addf %11, %12 : vector<8x1xf32>
    %14 = math.rsqrt %13 : vector<8x1xf32>
    %c0_5 = arith.constant 0 : index
    %c0_6 = arith.constant 0 : index
    %15 = vector.load %arg2[%c0_5, %c0_6] : memref<8x1xf32, #tpu.memory_space<vmem>>, vector<8x1xf32>
    %16 = arith.mulf %14, %15 : vector<8x1xf32>
    %c0_7 = arith.constant 0 : index
    %c0_8 = arith.constant 0 : index
    %17 = vector.load %arg3[%c0_7, %c0_8] : memref<8x1xf32, #tpu.memory_space<vmem>>, vector<8x1xf32>
    %18 = arith.mulf %4, %16 : vector<8x1xf32>
    %19 = arith.subf %17, %18 : vector<8x1xf32>
    %20 = vector.broadcast %16 : vector<8x1xf32> to vector<8x256xf32>
    %21 = arith.mulf %0, %20 : vector<8x256xf32>
    %22 = vector.broadcast %19 : vector<8x1xf32> to vector<8x256xf32>
    %23 = arith.addf %21, %22 : vector<8x256xf32>
    %c0_9 = arith.constant 0 : index
    %c0_10 = arith.constant 0 : index
    %24 = vector.load %arg4[%c0_9, %c0_10] : memref<8x256xf32, #tpu.memory_space<vmem>>, vector<8x256xf32>
    tpu.vector_store %arg4[%c0_9, %c0_10], %23 {strides = array<i32>} : memref<8x256xf32, #tpu.memory_space<vmem>>, vector<8x256xf32>,
    return
  }
  func.func @transform_0(%arg0: i32) -> (i32, i32) {
    %c0_i32 = arith.constant 0 : i32
    %c0_i32_0 = arith.constant 0 : i32
    return %arg0, %c0_i32 : i32, i32
  }
  func.func @transform_1(%arg0: i32) -> (i32, i32) {
    %c0_i32 = arith.constant 0 : i32
    %c0_i32_0 = arith.constant 0 : i32
    return %arg0, %c0_i32 : i32, i32
  }
  func.func @transform_2(%arg0: i32) -> (i32, i32) {
    %c0_i32 = arith.constant 0 : i32
    %c0_i32_0 = arith.constant 0 : i32
    return %arg0, %c0_i32 : i32, i32
  }
  func.func @transform_3(%arg0: i32) -> (i32, i32) {
    %c0_i32 = arith.constant 0 : i32
    %c0_i32_0 = arith.constant 0 : i32
    return %arg0, %c0_i32 : i32, i32
  }
}

</mosaic_0001>

<bundles_post_ra>
// kernel: tpu_custom_call.1
= control target key start
LH: loop header
LB: loop body
LE: loop exit
PB: predicated region body
PF: predicated region fallthrough
CT: control target
= control target key end

     0   :  { %s143_s0 = inlined_call_operand.vmem [shape: f32[8,256], index: 0, kind: input, shape index: {}]   ;;  %s144_s1 = inlined_call_operand.vmem [shape: f32[8,1], index: 1, kind: input, shape index: {}]   ;;  %s145_s2 = inlined_call_operand.vmem [shape: f32[8,1], index: 2, kind: input, shape index: {}]   ;;  %s146_s3 = inlined_call_operand.hbm [shape: f32[8,256], index: 3, kind: output, shape index: {}]  }
   0x1   :  { %v15_v0 = vld [vmem:[%s143_s0] sm:$0xff]  ;;  %v16_v1 = vld [vmem:[%s143_s0 + $0x8] sm:$0xff] }
   0x2   :  { %8 = vsyncpa [#allocation3], 0  ;;  %v17_v2 = vadd.f32 %v16_v1, %v15_v0  ;;  %v97_v10 = vmov 0   ;;  %v32_v14 = vld [vmem:[%s144_s1] sm:$0xff]  ;;  %s98_s19 = smov [#allocation2]  }
   0x3   :  { %69 = vset.pattern.permute.xlu1 %v97_v10  ;;  %70 = vset.pattern.permute.xlu0 %v97_v10  ;;  %v34_v17 = vld [vmem:[%s145_s2] sm:$0xff]  ;;  %s59_s20 = sshll.u32 %s98_s19, 4  ;;  %s60_s20 = int_to_ptr.vmem [resolvable:$true] %s59_s20 }
   0x4   :  { %18 = vadd.xlane.f32.xlu0 %v17_v2  ;;  %s73_s1 = scalar_lea.vmem %s60_s20, 256  ;;  %p78_p1 = scmp.lt.s32.totalorder %s60_s20, %s60_s20 }
   0x5   :  { %p74_p0 = scmp.ne.s32.totalorder %s60_s20, %s73_s1  ;;  %p79_p2 = scmp.lt.s32.totalorder %s73_s1, %s73_s1 }
   0x7   :  { %p80_p3 = por %p79_p2, %p78_p1 }
   0x9   :  { %p81_p4 = pnand %p80_p3, %p74_p0 }
  0x91   :  { %v19_v3 = vpop.xlane.xlu0 %18 }
  0x92   :  { %v21_v4 = vmul.f32 0.00390625, %v19_v3 }
  0x94   :  { %v22_v5 = vsub.f32 %v15_v0, %v21_v4  ;;  %v23_v6 = vsub.f32 %v16_v1, %v21_v4 }
  0x96   :  { %v24_v7 = vmul.f32 %v22_v5, %v22_v5  ;;  %v25_v8 = vmul.f32 %v23_v6, %v23_v6 }
  0x98   :  { %v26_v9 = vadd.f32 %v25_v8, %v24_v7 }
  0x9a   :  { %27 = vadd.xlane.f32.xlu0 %v26_v9 }
 0x127   :  { %v28_v11 = vpop.xlane.xlu0 %27 }
 0x128   :  { %v29_v12 = vmul.f32 0.00390625, %v28_v11 }
 0x12a   :  { %v30_v13 = vadd.f32 1e-05, %v29_v12 }
 0x12c   :  { %71 = vrsqrt.f32 %v30_v13 }
 0x136   :  { %v72_v15 = vpop.eup %71 }
 0x137   :  { %v33_v16 = vmul.f32 %v72_v15, %v32_v14 }
 0x139   :  { %39 = vperm.xlu1 %69, %v33_v16   ;;  %v35_v18 = vmul.f32 %v33_v16, %v21_v4 }
 0x13b   :  { %v36_v19 = vsub.f32 %v34_v17, %v35_v18 }
 0x13d   :  { %46 = vperm.xlu1 %69, %v36_v19  }
 0x1b8   :  { %v40_v20 = vpop.permute.xlu1 %39 }
 0x1b9   :  { %v42_v21 = vmul.f32 %v40_v20, %v15_v0  ;;  %v43_v22 = vmul.f32 %v40_v20, %v16_v1 }
 0x1bc   :  { %v47_v23 = vpop.permute.xlu1 %46 }
 0x1bd   :  { %v49_v24 = vadd.f32 %v47_v23, %v42_v21  ;;  %v50_v25 = vadd.f32 %v47_v23, %v43_v22 }
 0x1bf   :  { %51 = vst [vmem:[#allocation2] sm:$0xff] %v49_v24  ;;  %52 = vst [vmem:[#allocation2 + $0x8] sm:$0xff] %v50_v25 }
 0x1c0   :  { %84 = shalt.err (!%p81_p4)
}
 0x1c1   :  { %s85_s22 = scalar_lea.hbm %s146_s3, 256 }
 0x1c2   :  { %p86_p5 = scmp.ne.s32.totalorder %s146_s3, %s85_s22  ;;  %p89_p6 = scmp.lt.u32.totalorder %s85_s22, %s146_s3 }
 0x1c4   :  { %p91_p7 = pnand %p89_p6, %p86_p5 }
 0x1c6   :  { %94 = shalt.err (!%p91_p7)
}
 0x1c7   :  { %62 = dma.vmem_to_hbm [thread:$0]  %s60_s20, 256, %s146_s3, [#allocation3]  }
 0x1c8   :  { %95 = dma.done.wait [#allocation3], 256  }
 0x1c9   :  { %96 = vsyncadd [#allocation3], 4294967040 }
 0x1ca   :  { %66 = vsyncpa [#allocation3], 1 }

</bundles_post_ra>
